<compile_context>
chip_gen: v7x
topology: tpu7x:2x2x1
jax: 0.10.0
libtpu: 0.0.40
codegen_flags: <defaults>
</compile_context>

<pallas_src>
import jax
import jax.numpy as jnp
from jax.experimental import pallas as pl
from jax.experimental.pallas import tpu as pltpu


def nn_kernel(x_ref, u_ref,
              w1_ref, b1_ref, w2_ref, b2_ref,
              wa_ref, ba_ref, wb_ref, bb_ref,
              out_ref):
    # Batch-on-lanes layout: activations are (features, batch_tile), f32.
    x = x_ref[...]                                                   # (in, TB)

    # trunk: Linear(in,32) -> tanh -> Linear(32,16) -> tanh
    h = jnp.tanh(jnp.dot(w1_ref[...], x, preferred_element_type=jnp.float32)
                 + b1_ref[...])                                      # (32, TB)
    h = jnp.tanh(jnp.dot(w2_ref[...], h, preferred_element_type=jnp.float32)
                 + b2_ref[...])                                      # (16, TB)

    # fused branch hidden layers: single (24,16) matmul + one tanh for all 3 branches
    t = jnp.tanh(jnp.dot(wa_ref[...], h, preferred_element_type=jnp.float32)
                 + ba_ref[...])                                      # (24, TB)

    # fused branch output layers: block-diagonal (3*out, 24) matmul
    packed = (jnp.dot(wb_ref[...], t, preferred_element_type=jnp.float32)
              + bb_ref[...])                                         # (3*out, TB)

    out_size = out_ref.shape[0]
    o1 = packed[0 * out_size:1 * out_size, :]
    o2 = packed[1 * out_size:2 * out_size, :]
    o3 = packed[2 * out_size:3 * out_size, :]

    # per-sample branch select; u is (1, TB) int32, broadcast over out_size sublanes.
    # NOTE: u outside {0,1,2} falls through to branch 3 (matches the reference's
    # clipping gather for u > 2).
    u = u_ref[...]
    out_ref[...] = jnp.where(u == 0, o1, jnp.where(u == 1, o2, o3))


def pack_branch_params(params):
    """Concat branch hidden layers; block-diagonalize branch output layers.

    Weights are in torch layout (out_features, in_features); biases are (out, 1).
    """
    out_size = params["b1b_w"].shape[0]
    wa = jnp.concatenate([params["b1a_w"], params["b2a_w"], params["b3a_w"]], axis=0)  # (24, 16)
    ba = jnp.concatenate([params["b1a_b"], params["b2a_b"], params["b3a_b"]], axis=0)  # (24, 1)
    z = jnp.zeros((out_size, 8), jnp.float32)
    wb = jnp.concatenate([
        jnp.concatenate([params["b1b_w"], z, z], axis=1),
        jnp.concatenate([z, params["b2b_w"], z], axis=1),
        jnp.concatenate([z, z, params["b3b_w"]], axis=1),
    ], axis=0)                                                                          # (3*out, 24)
    bb = jnp.concatenate([params["b1b_b"], params["b2b_b"], params["b3b_b"]], axis=0)  # (3*out, 1)
    return wa, ba, wb, bb


def _pick_tile(n, tile_batch):
    """Lane-aligned batch tile; keeps >=2 grid steps on large batches (v7x megacore)."""
    if n <= 128:
        return n  # single full-array tile (block dims equal to array dims are legal)
    tb = min(tile_batch, n)
    tb = max(128, (tb // 128) * 128)          # last block dim must be 128-aligned
    if tb >= n and n >= 256:
        tb = max(128, ((n // 2) // 128) * 128)  # ensure grid >= 2 so both v7x TCs work
    return tb


def nn_forward(x, u, params, tile_batch=4096):
    n, in_size = x.shape
    out_size = params["b1b_w"].shape[0]

    # Batch-on-lanes layout: features on sublanes, batch on lanes.
    x_t = x.astype(jnp.float32).T                     # (in_size, n)
    u_row = u.astype(jnp.int32).reshape(1, -1)        # (1, n), mirrors u.view(-1)

    wa, ba, wb, bb = pack_branch_params(params)

    tb = _pick_tile(n, tile_batch)
    grid = (pl.cdiv(n, tb),)

    args = (
        x_t, u_row,
        params["w1"], params["b1"], params["w2"], params["b2"],
        wa, ba, wb, bb,
    )

    def batch_spec(feat):
        # feature rows resident, batch tiled along lanes
        return pl.BlockSpec((feat, tb), lambda i: (0, i))

    def resident_spec(arr):
        # weights/biases: same block every grid step -> stays VMEM-resident
        return pl.BlockSpec(arr.shape, lambda i: (0, 0))

    in_specs = ([batch_spec(in_size), batch_spec(1)]
                + [resident_spec(a) for a in args[2:]])

    # advisory cost hint for XLA scheduling around the custom call
    flops = 2 * n * (in_size * 32 + 32 * 16 + 16 * 24 + 24 * 3 * out_size)
    transcendentals = n * (32 + 16 + 24)
    bytes_accessed = 4 * n * (in_size + 1 + out_size)

    out_fm = pl.pallas_call(
        nn_kernel,
        out_shape=jax.ShapeDtypeStruct((out_size, n), jnp.float32),
        grid=grid,
        in_specs=in_specs,
        out_specs=batch_spec(out_size),
        compiler_params=pltpu.CompilerParams(
            dimension_semantics=("parallel",),  # megacore sharding on v7x
        ),
        cost_estimate=pl.CostEstimate(
            flops=flops,
            transcendentals=transcendentals,
            bytes_accessed=bytes_accessed,
        ),
    )(*args)

    return out_fm.T  # back to (n, out_size) row-major like the torch module


# ---------------- parameter init (torch layout: W is (out, in), b is (out, 1)) ----------


def xavier_uniform(key, fan_in, fan_out):
    bound = (6.0 / (fan_in + fan_out)) ** 0.5
    return jax.random.uniform(key, (fan_out, fan_in), jnp.float32, -bound, bound)


def default_bias(key, fan_in, fan_out):
    bound = 1.0 / (fan_in ** 0.5)
    return jax.random.uniform(key, (fan_out, 1), jnp.float32, -bound, bound)


def init_params(key, in_size, out_size):
    keys = jax.random.split(key, 16)
    p = {}
    p["w1"], p["b1"] = xavier_uniform(keys[0], in_size, 32), default_bias(keys[1], in_size, 32)
    p["w2"], p["b2"] = xavier_uniform(keys[2], 32, 16), default_bias(keys[3], 32, 16)
    p["b1a_w"], p["b1a_b"] = xavier_uniform(keys[4], 16, 8), default_bias(keys[5], 16, 8)
    p["b1b_w"], p["b1b_b"] = xavier_uniform(keys[6], 8, out_size), default_bias(keys[7], 8, out_size)
    p["b2a_w"], p["b2a_b"] = xavier_uniform(keys[8], 16, 8), default_bias(keys[9], 16, 8)
    p["b2b_w"], p["b2b_b"] = xavier_uniform(keys[10], 8, out_size), default_bias(keys[11], 8, out_size)
    p["b3a_w"], p["b3a_b"] = xavier_uniform(keys[12], 16, 8), default_bias(keys[13], 16, 8)
    p["b3b_w"], p["b3b_b"] = xavier_uniform(keys[14], 8, out_size), default_bias(keys[15], 8, out_size)
    return p


def nn_reference(x, u, p):
    """Pure-JAX reference in the torch (batch, features) layout."""
    h = jnp.tanh(x @ p["w1"].T + p["b1"].T)
    h = jnp.tanh(h @ p["w2"].T + p["b2"].T)

    def branch(wa, ba, wb, bb):
        return jnp.tanh(h @ wa.T + ba.T) @ wb.T + bb.T

    o = jnp.stack([branch(p["b1a_w"], p["b1a_b"], p["b1b_w"], p["b1b_b"]),
                   branch(p["b2a_w"], p["b2a_b"], p["b2b_w"], p["b2b_b"]),
                   branch(p["b3a_w"], p["b3a_b"], p["b3b_w"], p["b3b_b"])], axis=1)
    return o[jnp.arange(x.shape[0]), u.astype(jnp.int32)]


if __name__ == "__main__":
    in_size, out_size, batch = 4, 2, 512
    key = jax.random.PRNGKey(0)
    kx, ku, kp = jax.random.split(key, 3)

    x = jax.random.normal(kx, (batch, in_size), jnp.float32)
    u = jax.random.randint(ku, (batch, 1), 0, 3, jnp.int32)  # 2-D like torch input; flattened inside
    params = init_params(kp, in_size, out_size)

    # small tile so the multi-step grid / pipelining path is exercised (grid = 4)
    out = nn_forward(x, u, params, tile_batch=128)
    out = jax.block_until_ready(out)

    ref = nn_reference(x, u.reshape(-1), params)
    assert out.shape == (batch, out_size)
    assert jnp.allclose(out, ref, atol=1e-5, rtol=1e-5)

    print("KERNEL_OK")
</pallas_src>

<mosaic_0001>
module attributes {stable_mosaic.version = 11 : i64} {
  func.func @nn_kernel(%arg0: i32, %arg1: memref<4x128xf32, #tpu.memory_space<vmem>>, %arg2: memref<1x128xi32, #tpu.memory_space<vmem>>, %arg3: memref<32x4xf32, #tpu.memory_space<vmem>>, %arg4: memref<32x1xf32, #tpu.memory_space<vmem>>, %arg5: memref<16x32xf32, #tpu.memory_space<vmem>>, %arg6: memref<16x1xf32, #tpu.memory_space<vmem>>, %arg7: memref<24x16xf32, #tpu.memory_space<vmem>>, %arg8: memref<24x1xf32, #tpu.memory_space<vmem>>, %arg9: memref<6x24xf32, #tpu.memory_space<vmem>>, %arg10: memref<6x1xf32, #tpu.memory_space<vmem>>, %arg11: memref<2x128xf32, #tpu.memory_space<vmem>>) attributes {dimension_semantics = [#tpu.dimension_semantics<parallel>], iteration_bounds = array<i64: 4>, scalar_prefetch = 0 : i64, scratch_operands = 0 : i64, tpu.core_type = #tpu.core_type<tc>, window_params = [{transform_indices = @transform_0, window_bounds = array<i64: 4, 128>}, {transform_indices = @transform_1, window_bounds = array<i64: 1, 128>}, {pipeline_mode = #tpu.pipeline_mode<synchronous>, transform_indices = @transform_2, window_bounds = array<i64: 32, 4>}, {pipeline_mode = #tpu.pipeline_mode<synchronous>, transform_indices = @transform_3, window_bounds = array<i64: 32, 1>}, {pipeline_mode = #tpu.pipeline_mode<synchronous>, transform_indices = @transform_4, window_bounds = array<i64: 16, 32>}, {pipeline_mode = #tpu.pipeline_mode<synchronous>, transform_indices = @transform_5, window_bounds = array<i64: 16, 1>}, {pipeline_mode = #tpu.pipeline_mode<synchronous>, transform_indices = @transform_6, window_bounds = array<i64: 24, 16>}, {pipeline_mode = #tpu.pipeline_mode<synchronous>, transform_indices = @transform_7, window_bounds = array<i64: 24, 1>}, {pipeline_mode = #tpu.pipeline_mode<synchronous>, transform_indices = @transform_8, window_bounds = array<i64: 6, 24>}, {pipeline_mode = #tpu.pipeline_mode<synchronous>, transform_indices = @transform_9, window_bounds = array<i64: 6, 1>}, {transform_indices = @transform_10, window_bounds = array<i64: 2, 128>}]} {
    %c0 = arith.constant 0 : index
    %c0_0 = arith.constant 0 : index
    %0 = vector.load %arg1[%c0, %c0_0] : memref<4x128xf32, #tpu.memory_space<vmem>>, vector<4x128xf32>
    %c0_1 = arith.constant 0 : index
    %c0_2 = arith.constant 0 : index
    %1 = vector.load %arg3[%c0_1, %c0_2] : memref<32x4xf32, #tpu.memory_space<vmem>>, vector<32x4xf32>
    %cst = arith.constant dense<0.000000e+00> : vector<32x128xf32>
    %2 = tpu.matmul %1, %0, %cst {dimension_numbers = #tpu.dot_dimension_numbers<[1], [0], [0], [1], [0, 0, 1, 1], [], []>} : vector<32x4xf32>, vector<4x128xf32>, vector<32x128xf32> -> vector<32x128xf32>
    %c0_3 = arith.constant 0 : index
    %c0_4 = arith.constant 0 : index
    %3 = vector.load %arg4[%c0_3, %c0_4] : memref<32x1xf32, #tpu.memory_space<vmem>>, vector<32x1xf32>
    %4 = vector.broadcast %3 : vector<32x1xf32> to vector<32x128xf32>
    %5 = arith.addf %2, %4 : vector<32x128xf32>
    %6 = math.tanh %5 : vector<32x128xf32>
    %c0_5 = arith.constant 0 : index
    %c0_6 = arith.constant 0 : index
    %7 = vector.load %arg5[%c0_5, %c0_6] : memref<16x32xf32, #tpu.memory_space<vmem>>, vector<16x32xf32>
    %cst_7 = arith.constant dense<0.000000e+00> : vector<16x128xf32>
    %8 = tpu.matmul %7, %6, %cst_7 {dimension_numbers = #tpu.dot_dimension_numbers<[1], [0], [0], [1], [0, 0, 1, 1], [], []>} : vector<16x32xf32>, vector<32x128xf32>, vector<16x128xf32> -> vector<16x128xf32>
    %c0_8 = arith.constant 0 : index
    %c0_9 = arith.constant 0 : index
    %9 = vector.load %arg6[%c0_8, %c0_9] : memref<16x1xf32, #tpu.memory_space<vmem>>, vector<16x1xf32>
    %10 = vector.broadcast %9 : vector<16x1xf32> to vector<16x128xf32>
    %11 = arith.addf %8, %10 : vector<16x128xf32>
    %12 = math.tanh %11 : vector<16x128xf32>
    %c0_10 = arith.constant 0 : index
    %c0_11 = arith.constant 0 : index
    %13 = vector.load %arg7[%c0_10, %c0_11] : memref<24x16xf32, #tpu.memory_space<vmem>>, vector<24x16xf32>
    %cst_12 = arith.constant dense<0.000000e+00> : vector<24x128xf32>
    %14 = tpu.matmul %13, %12, %cst_12 {dimension_numbers = #tpu.dot_dimension_numbers<[1], [0], [0], [1], [0, 0, 1, 1], [], []>} : vector<24x16xf32>, vector<16x128xf32>, vector<24x128xf32> -> vector<24x128xf32>
    %c0_13 = arith.constant 0 : index
    %c0_14 = arith.constant 0 : index
    %15 = vector.load %arg8[%c0_13, %c0_14] : memref<24x1xf32, #tpu.memory_space<vmem>>, vector<24x1xf32>
    %16 = vector.broadcast %15 : vector<24x1xf32> to vector<24x128xf32>
    %17 = arith.addf %14, %16 : vector<24x128xf32>
    %18 = math.tanh %17 : vector<24x128xf32>
    %c0_15 = arith.constant 0 : index
    %c0_16 = arith.constant 0 : index
    %19 = vector.load %arg9[%c0_15, %c0_16] : memref<6x24xf32, #tpu.memory_space<vmem>>, vector<6x24xf32>
    %cst_17 = arith.constant dense<0.000000e+00> : vector<6x128xf32>
    %20 = tpu.matmul %19, %18, %cst_17 {dimension_numbers = #tpu.dot_dimension_numbers<[1], [0], [0], [1], [0, 0, 1, 1], [], []>} : vector<6x24xf32>, vector<24x128xf32>, vector<6x128xf32> -> vector<6x128xf32>
    %c0_18 = arith.constant 0 : index
    %c0_19 = arith.constant 0 : index
    %21 = vector.load %arg10[%c0_18, %c0_19] : memref<6x1xf32, #tpu.memory_space<vmem>>, vector<6x1xf32>
    %22 = vector.broadcast %21 : vector<6x1xf32> to vector<6x128xf32>
    %23 = arith.addf %20, %22 : vector<6x128xf32>
    %24 = vector.extract_strided_slice %23 {offsets = [0, 0], sizes = [2, 128], strides = [1, 1]} : vector<6x128xf32> to vector<2x128xf32>
    %25 = vector.extract_strided_slice %23 {offsets = [2, 0], sizes = [2, 128], strides = [1, 1]} : vector<6x128xf32> to vector<2x128xf32>
    %26 = vector.extract_strided_slice %23 {offsets = [4, 0], sizes = [2, 128], strides = [1, 1]} : vector<6x128xf32> to vector<2x128xf32>
    %c0_20 = arith.constant 0 : index
    %c0_21 = arith.constant 0 : index
    %27 = vector.load %arg2[%c0_20, %c0_21] : memref<1x128xi32, #tpu.memory_space<vmem>>, vector<1x128xi32>
    %c0_i32 = arith.constant 0 : i32
    %28 = vector.broadcast %c0_i32 : i32 to vector<1x128xi32>
    %29 = arith.cmpi eq, %27, %28 : vector<1x128xi32>
    %c1_i32 = arith.constant 1 : i32
    %30 = vector.broadcast %c1_i32 : i32 to vector<1x128xi32>
    %31 = arith.cmpi eq, %27, %30 : vector<1x128xi32>
    %32 = vector.shape_cast %31 : vector<1x128xi1> to vector<1x128xi1>
    %33 = vector.broadcast %32 : vector<1x128xi1> to vector<2x128xi1>
    %34 = arith.select %33, %25, %26 : vector<2x128xi1>, vector<2x128xf32>
    %35 = vector.shape_cast %29 : vector<1x128xi1> to vector<1x128xi1>
    %36 = vector.broadcast %35 : vector<1x128xi1> to vector<2x128xi1>
    %37 = arith.select %36, %24, %34 : vector<2x128xi1>, vector<2x128xf32>
    %c0_22 = arith.constant 0 : index
    %c0_23 = arith.constant 0 : index
    %38 = vector.load %arg11[%c0_22, %c0_23] : memref<2x128xf32, #tpu.memory_space<vmem>>, vector<2x128xf32>
    tpu.vector_store %arg11[%c0_22, %c0_23], %37 {strides = array<i32>} : memref<2x128xf32, #tpu.memory_space<vmem>>, vector<2x128xf32>,
    return
  }
  func.func @transform_0(%arg0: i32) -> (i32, i32) {
    %c0_i32 = arith.constant 0 : i32
    %c0_i32_0 = arith.constant 0 : i32
    return %c0_i32, %arg0 : i32, i32
  }
  func.func @transform_1(%arg0: i32) -> (i32, i32) {
    %c0_i32 = arith.constant 0 : i32
    %c0_i32_0 = arith.constant 0 : i32
    return %c0_i32, %arg0 : i32, i32
  }
  func.func @transform_2(%arg0: i32) -> (i32, i32) {
    %c0_i32 = arith.constant 0 : i32
    %c0_i32_0 = arith.constant 0 : i32
    %c0_i32_1 = arith.constant 0 : i32
    return %c0_i32, %c0_i32_0 : i32, i32
  }
  func.func @transform_3(%arg0: i32) -> (i32, i32) {
    %c0_i32 = arith.constant 0 : i32
    %c0_i32_0 = arith.constant 0 : i32
    %c0_i32_1 = arith.constant 0 : i32
    return %c0_i32, %c0_i32_0 : i32, i32
  }
  func.func @transform_4(%arg0: i32) -> (i32, i32) {
    %c0_i32 = arith.constant 0 : i32
    %c0_i32_0 = arith.constant 0 : i32
    %c0_i32_1 = arith.constant 0 : i32
    return %c0_i32, %c0_i32_0 : i32, i32
  }
  func.func @transform_5(%arg0: i32) -> (i32, i32) {
    %c0_i32 = arith.constant 0 : i32
    %c0_i32_0 = arith.constant 0 : i32
    %c0_i32_1 = arith.constant 0 : i32
    return %c0_i32, %c0_i32_0 : i32, i32
  }
  func.func @transform_6(%arg0: i32) -> (i32, i32) {
    %c0_i32 = arith.constant 0 : i32
    %c0_i32_0 = arith.constant 0 : i32
    %c0_i32_1 = arith.constant 0 : i32
    return %c0_i32, %c0_i32_0 : i32, i32
  }
  func.func @transform_7(%arg0: i32) -> (i32, i32) {
    %c0_i32 = arith.constant 0 : i32
    %c0_i32_0 = arith.constant 0 : i32
    %c0_i32_1 = arith.constant 0 : i32
    return %c0_i32, %c0_i32_0 : i32, i32
  }
  func.func @transform_8(%arg0: i32) -> (i32, i32) {
    %c0_i32 = arith.constant 0 : i32
    %c0_i32_0 = arith.constant 0 : i32
    %c0_i32_1 = arith.constant 0 : i32
    return %c0_i32, %c0_i32_0 : i32, i32
  }
  func.func @transform_9(%arg0: i32) -> (i32, i32) {
    %c0_i32 = arith.constant 0 : i32
    %c0_i32_0 = arith.constant 0 : i32
    %c0_i32_1 = arith.constant 0 : i32
    return %c0_i32, %c0_i32_0 : i32, i32
  }
  func.func @transform_10(%arg0: i32) -> (i32, i32) {
    %c0_i32 = arith.constant 0 : i32
    %c0_i32_0 = arith.constant 0 : i32
    return %c0_i32, %arg0 : i32, i32
  }
}

</mosaic_0001>

<bundles_post_ra>
// kernel: tpu_custom_call.1
= control target key start
LH: loop header
LB: loop body
LE: loop exit
PB: predicated region body
PF: predicated region fallthrough
CT: control target
= control target key end

     0   :  { %15 = vsyncpa [#allocation3], 0  ;;  %s1365_s0 = inlined_call_operand.vmem [shape: f32[4,512], index: 0, kind: input, shape index: {}]   ;;  %s1366_s1 = inlined_call_operand.vmem [shape: s32[1,512], index: 1, kind: input, shape index: {}]   ;;  %s1367_s2 = inlined_call_operand.vmem [shape: f32[32,4], index: 2, kind: input, shape index: {}]   ;;  %s1368_s3 = inlined_call_operand.vmem [shape: f32[32,1], index: 3, kind: input, shape index: {}]   ;;  %s1369_s4 = inlined_call_operand.vmem [shape: f32[16,32], index: 4, kind: input, shape index: {}]   ;;  %s1370_s5 = inlined_call_operand.vmem [shape: f32[16,1], index: 5, kind: input, shape index: {}]   ;;  %s1371_s6 = inlined_call_operand.vmem [shape: f32[24,16], index: 6, kind: input, shape index: {}]   ;;  %s1372_s7 = inlined_call_operand.vmem [shape: f32[24,1], index: 7, kind: input, shape index: {}]   ;;  %s1373_s8 = inlined_call_operand.vmem [shape: f32[6,24], index: 8, kind: input, shape index: {}]   ;;  %s1374_s9 = inlined_call_operand.vmem [shape: f32[6,1], index: 9, kind: input, shape index: {}]   ;;  %s1375_s10 = inlined_call_operand.hbm [shape: f32[2,512], index: 10, kind: output, shape index: {}]  }
   0x1   :  { %17 = vsyncpa [#allocation3 + $0x1], 0  ;;  %s1186_s13 = smov 0   ;;  %s1188_s14 = smov 0  }
   0x2   :  { %s1190_s15 = smov 0   ;;  %s1192_s16 = smov 0  }
   0x3 LB: > { %1377 = sst [smem:[#allocation5_spill]] %s1120_s15  ;;  %s1207_s17 = sadd.s32 4294967295, %s1124_s16   ;;  %s1124_s16 = sphi %s1192_s16, %s1385_s16   ;;  %s1120_s15 = sphi %s1190_s15, %s1382_s15   ;;  %s1116_s14 = sphi %s1188_s14, %s1384_s14   ;;  %s1112_s13 = sphi %s1186_s13, %s1383_s13  }
   0x4   : > { %s903_s18 = sadd.s32 4294967294, %s1124_s16   ;;  %s1211_s19 = sadd.s32 1, %s1124_s16  }
   0x5   : > { %s250_s20 = sadd.s32 1, %s1120_s15  ;;  %s247_s21 = ssub.s32 %s1124_s16, %s1211_s19 }
   0x6   : > { %p260_p0 = scmp.ne.s32.totalorder %s1120_s15, %s1116_s14  ;;  %p248_p1 = scmp.eq.s32.totalorder %s247_s21, 0 }
   0x7   : > { %p261_p2 = scmp.eq.s32.totalorder %s1207_s17, 3  ;;  %p266_p3 = scmp.ne.s32.totalorder %s1116_s14, %s1112_s13 }
   0x8   : > { %p267_p4 = scmp.eq.s32.totalorder %s903_s18, 3  ;;  %p906_p7 = scmp.ge.s32.totalorder %s1124_s16, 1 }
   0x9   : > { %s1222_s22 = scalar_select %p248_p1, %s1120_s15, %s250_s20  }
   0xa   : > { %p1224_p5 = por %p261_p2, %p260_p0  ;;  %p1228_p6 = por %p267_p4, %p266_p3 }
   0xb   : > { %1378 = sst [smem:[#allocation6_spill]] %s1222_s22  ;;  %p322_p8 = scmp.lt.s32.totalorder %s1124_s16, 5 }
   0xd   : > { %p323_p9 = pnand %p906_p7, %p322_p8 }
   0xe   : > { %p362_p10 = scmp.lt.s32.totalorder (!%p323_p9), %s1207_s17, 3  ;;  %v370_v0 = vld [vmem:[%s1367_s2] sm:$0xff] (!%p323_p9)  ;;  %vm398_vm0 = vcmask (!%p323_p9), 31744   ;;  %v376_v2 = vld [vmem:[%s1368_s3 + $0x10] sm:$0xff] (!%p323_p9)  ;;  %v1126_v3 = vmov (!%p323_p9), 0   ;;  %vm411_vm1 = vcmask (!%p323_p9), 1043456  }
   0xf   : > { %326 = sbr.rel (%p323_p9) target bundleno = 966 (0x3c6), region = 60  ;;  %946 = vmatprep.mubr.msk.f32.mxu1 (!%p323_p9), %vm398_vm0, %v370_v0  ;;  %v374_v1 = vld [vmem:[%s1368_s3] sm:$0xff] (!%p323_p9)  ;;  %1042 = vset.pattern.permute.xlu0 (!%p323_p9), %v1126_v3  ;;  %v375_v4 = vld [vmem:[%s1368_s3 + $0x8] sm:$0xff] (!%p323_p9)  ;;  %v377_v6 = vld [vmem:[%s1368_s3 + $0x18] sm:$0xff] (!%p323_p9)  ;;  %vm518_vm4 = vcmask (!%p323_p9), 261120   ;;  %v1127_v39 = vmov (!%p323_p9), 0.0|0.0  }
  0x10   : > { %1043 = vset.pattern.permute.xlu1 (!%p323_p9), %v1126_v3  ;;  %380 = vperm.xlu0 (!%p323_p9), %1042, %v374_v1   ;;  %v371_v8 = vld [vmem:[%s1367_s2 + $0x8] sm:$0xff] (!%p323_p9)  ;;  %v372_v9 = vld [vmem:[%s1367_s2 + $0x10] sm:$0xff] (!%p323_p9)  ;;  %v506_v12 = vld [vmem:[%s1370_s5] sm:$0xff] (!%p323_p9)  ;;  %vm1128_vm5 = vmmov (!%p323_p9), 0   ;;  %v1129_v40 = vmov (!%p323_p9), 0.0   ;;  %vm623_vm6 = vcmask (!%p323_p9), 130048  }
  0x11   : > { %390 = vperm.xlu1 (!%p323_p9), %1043, %v376_v2   ;;  %v507_v13 = vld [vmem:[%s1370_s5 + $0x8] sm:$0xff] (!%p323_p9)  ;;  %v373_v14 = vld [vmem:[%s1367_s2 + $0x18] sm:$0xff] (!%p323_p9)  ;;  %v605_v15 = vld [vmem:[%s1372_s7] sm:$0xff] (!%p323_p9)  ;;  %993 = vmatprep.subr.bf16.mxu0 (!%p323_p9), %v1127_v39  ;;  %vm723_vm7 = vcmask (!%p323_p9), 195584   ;;  %s359_s22 = sand.u32 (!%p323_p9), 1, %s1116_s14   ;;  %s921_s15 = sshll.u32 (!%p323_p9), %s1207_s17, 5 }
  0x12   : > { %v606_v16 = vld [vmem:[%s1372_s7 + $0x8] sm:$0xff] (!%p323_p9)  ;;  %v607_v17 = vld [vmem:[%s1372_s7 + $0x10] sm:$0xff] (!%p323_p9)  ;;  %v717_v18 = vld [vmem:[%s1374_s9] sm:$0x3f] (!%p323_p9)  ;;  %967 = vmatprep.mubr.msk.f32.mxu0 (!%p323_p9), %vm1128_vm5, %v1129_v40  ;;  %s1323_s28 = scalar_lea.hbm (!%p323_p9), %s1375_s10, %s921_s15 }
  0x13   : > { %v504_v19 = vld [vmem:[%s1369_s4] sm:$0xff] (!%p323_p9)  ;;  %v505_v38 = vld [vmem:[%s1369_s4 + $0x8] sm:$0xff] (!%p323_p9)  ;;  %v604_v52 = vld [vmem:[%s1371_s6 + $0x10] sm:$0xff] (!%p323_p9) }
  0x14   : > { %385 = vperm.xlu0 (!%p323_p9), %1042, %v375_v4   ;;  %v602_v50 = vld [vmem:[%s1371_s6] sm:$0xff] (!%p323_p9)  ;;  %v603_v51 = vld [vmem:[%s1371_s6 + $0x8] sm:$0xff] (!%p323_p9) }
  0x15   : > { %395 = vperm.xlu1 (!%p323_p9), %1043, %v377_v6   ;;  %v716_v4 = vld [vmem:[%s1373_s8] sm:$0x3f] (!%p323_p9)  ;;  %v801_v6 = vlaneseq (!%p323_p9) }
  0x16   : > { %s363_s11 = scalar_select %p362_p10, %s1207_s17, 3 }
  0x17   : > { %s1130_s17 = smov [#allocation2]  }
  0x18   : > { %s908_s12 = sshll.u32 %s363_s11, 2  ;;  %s368_s21 = scalar_lea.vmem %s1366_s1, %s363_s11  ;;  %510 = vperm.xlu0 %1042, %v506_v12  }
  0x19   : > { %s365_s29 = scalar_lea.vmem %s1365_s0, %s908_s12  ;;  %v797_v5 = vld [vmem:[%s368_s21] sm:$0x1]  ;;  %515 = vperm.xlu1 %1043, %v507_v13   ;;  %s907_s12 = sshll.u32 %s359_s22, 1 }
  0x1a   : > { %v369_v7 = vld [vmem:[%s365_s29] sm:$0xf]  ;;  %vm798_vm2 = vcmp.eq.s32.totalorder %v797_v5, 0  ;;  %vm799_vm3 = vcmp.eq.s32.totalorder %v797_v5, 1  ;;  %s361_s21 = scalar_lea.vmem [#allocation2], %s907_s12  ;;  %s822_s29 = scalar_lea.sflag [#allocation3], %s359_s22 }
  0x1b   : > { %944 = vmatprep.subr.msk.mxu1 %vm411_vm1, %v369_v7  ;;  %v1264_v10 = vsel %vm799_vm3, 1, %v1126_v3  ;;  %v1266_v11 = vsel %vm798_vm2, 1, %v1126_v3  ;;  %s835_s25 = sshll.u32 %s361_s21, 4  ;;  %s1066_s18 = sshll.u32 %s1130_s17, 4  ;;  %s1325_s25 = int_to_ptr.vmem [resolvable:$true] %s835_s25  ;;  %s1067_s18 = int_to_ptr.vmem [resolvable:$false] %s1066_s18 }
  0x1c   : > { %945 = vmatpush3.msk.msra.mxu1 %vm411_vm1, %v369_v7  ;;  %610 = vperm.xlu0 %1042, %v605_v15   ;;  %v802_v7 = vshrl.u32 %v801_v6, 7  ;;  %s1062_s30 = scalar_lea.vmem %s1325_s25, 32  ;;  %s1068_s11 = scalar_lea.vmem %s1067_s18, 64 }
  0x1d   : > { %947 = vmatmul.mubr.msk.f32.vlgmr.msra.gmra.mrb[0].mxu1 %vm398_vm0, %v371_v8  ;;  %615 = vperm.xlu1 %1043, %v606_v16   ;;  %p1063_p11 = scmp.ne.s32.totalorder %s1325_s25, %s1062_s30  ;;  %p1069_p0 = scmp.lt.s32.totalorder %s1325_s25, %s1067_s18 }
  0x1e   : > { %949 = vmatprep.mubr.msk.f32.mxu1 %vm398_vm0, %v372_v9  ;;  %v803_v8 = vsub.s32 0, %v802_v7  ;;  %p1070_p1 = scmp.lt.s32.totalorder %s1068_s11, %s1062_s30 }
  0x1f   : > { %p1064_p12 = pnand %p1063_p11, %p1224_p5 }
  0x20   : > { %620 = vperm.xlu0 %1042, %v607_v17   ;;  %v804_v9 = vrot.slane %v1264_v10, %v803_v8  ;;  %v814_v16 = vrot.slane %v1266_v11, %v803_v8  ;;  %p1071_p2 = por %p1070_p1, %p1069_p0 }
  0x21   : > { %950 = vmatmul.mubr.msk.f32.gmra.mrb[2].mxu1 %vm398_vm0, %v373_v14  ;;  %720 = vperm.xlu1 %1043, %v717_v18   ;;  %p1065_p13 = pneg %p1064_p12 }
  0x22   : > { %960 = vmatprep.mubr.msk.f32.mxu1 %vm518_vm4, %v504_v19  ;;  %vm805_vm8 = vcmp.eq.s32.totalorder %v804_v9, 1  ;;  %vm815_vm9 = vcmp.eq.s32.totalorder %v814_v16, 1 }
  0x23   : > { %p1072_p3 = pnand %p1071_p2, %p1065_p13 }
  0x8f   : > { %v381_v20 = vpop.permute.xlu0 %380 }
  0x90   : > { %v391_v21 = vpop.permute.xlu1 %390 }
  0x93   : > { %v386_v22 = vpop.permute.xlu0 %385 }
  0x94   : > { %v396_v27 = vpop.permute.xlu1 %395 }
  0x97   : > { %v511_v43 = vpop.permute.xlu0 %510 }
  0x98   : > { %v516_v41 = vpop.permute.xlu1 %515 }
  0x9b   : > { %v611_v54 = vpop.permute.xlu0 %610 }
  0x9c   : > { %v616_v57 = vpop.permute.xlu1 %615 }
  0x9f   : > { %v621_v61 = vpop.permute.xlu0 %620 }
  0xa0   : > { %v721_v12 = vpop.permute.xlu1 %720 }
  0xf0   : > { %v948_v23 = vpop.f32.mrb[0].mxu1 }
  0xf1   : > { %v487_v24 = vadd.f32 %v948_v23, %v386_v22  ;;  %v481_v25 = vpop.f32.mrb[1].mxu1 }
  0xf2   : > { %v482_v26 = vadd.f32 %v481_v25, %v381_v20 }
  0xf3   : > { %1044 = vtanh.f32 %v487_v24 }
  0xf4   : > { %1046 = vtanh.f32 %v482_v26  ;;  %v951_v28 = vpop.f32.mrb[2].mxu1 }
  0xf5   : > { %v497_v29 = vadd.f32 %v951_v28, %v396_v27  ;;  %v491_v30 = vpop.f32.mrb[3].mxu1 }
  0xf6   : > { %v492_v31 = vadd.f32 %v491_v30, %v391_v21 }
  0xf7   : > { %1048 = vtanh.f32 %v497_v29 }
  0xf8   : > { %1050 = vtanh.f32 %v492_v31 }
  0xfd   : > { %v1045_v32 = vpop.eup %1044 }
  0xfe   : > { %v1047_v33 = vpop.eup %1046 }
  0xff   : > { %v985_v34 = vpack.c.bf16 %v1045_v32, %v1047_v33 }
 0x101   : > { %v1049_v35 = vpop.eup %1048  ;;  %986 = vmatprep.subr.bf16.mxu1 %v985_v34 }
 0x102   : > { %v1051_v36 = vpop.eup %1050  ;;  %988 = vmatpush3.bf16.msra.mxu1 %v985_v34 }
 0x103   : > { %v989_v37 = vpack.c.bf16 %v1049_v35, %v1051_v36 }
 0x105   : > { %990 = vmatprep.subr.bf16.mxu1 %v989_v37 }
 0x106   : > { %992 = vmatpush3.bf16.msra.mxu1 %v989_v37 }
 0x107   : > { %996 = vmatprep.subr.bf16.mxu1 %v1127_v39 }
 0x109   : > { %961 = vmatmul.mubr.msk.f32.vlgmr.msra.gmra.mrb[4].mxu1 %vm518_vm4, %v505_v38 }
 0x10a   : > { %982 = vmatprep.mubr.msk.f32.mxu1 %vm1128_vm5, %v1129_v40 }
 0x1dc   : > { %v962_v42 = vpop.f32.mrb[4].mxu1 }
 0x1dd   : > { %v597_v44 = vadd.f32 %v962_v42, %v516_v41  ;;  %v591_v45 = vpop.f32.mrb[5].mxu1 }
 0x1de   : > { %v592_v46 = vadd.f32 %v591_v45, %v511_v43 }
 0x1df   : > { %1052 = vtanh.f32 %v597_v44 }
 0x1e0   : > { %1054 = vtanh.f32 %v592_v46 }
 0x1e9   : > { %v1053_v47 = vpop.eup %1052 }
 0x1ea   : > { %v1055_v48 = vpop.eup %1054 }
 0x1eb   : > { %v994_v49 = vpack.c.bf16 %v1053_v47, %v1055_v48 }
 0x1ed   : > { %995 = vmatpush3.bf16.msra.mxu0 %v994_v49 }
 0x1f0   : > { %968 = vmatmul.mubr.msk.f32.vlgmr.msra.gmra.mrb[0].mxu0 %vm623_vm6, %v602_v50 }
 0x1f1   : > { %970 = vmatprep.mubr.msk.f32.mxu0 %vm1128_vm5, %v1129_v40 }
 0x1f4   : > { %971 = vmatmul.mubr.msk.f32.gmra.mrb[2].mxu0 %vm623_vm6, %v603_v51 }
 0x1f5   : > { %973 = vmatprep.mubr.msk.f32.mxu0 %vm1128_vm5, %v1129_v40 }
 0x1f8   : > { %974 = vmatmul.mubr.msk.f32.gmra.mrb[4].mxu0 %vm623_vm6, %v604_v52 }
 0x2c3   : > { %v699_v53 = vpop.f32.mrb[0].mxu0 }
 0x2c4   : > { %v969_v55 = vpop.f32.mrb[1].mxu0  ;;  %v700_v56 = vadd.f32 %v699_v53, %v611_v54 }
 0x2c6   : > { %1056 = vtanh.f32 %v700_v56 }
 0x2c7   : > { %v704_v58 = vpop.f32.mrb[2].mxu0 }
 0x2c8   : > { %v705_v59 = vadd.f32 %v704_v58, %v616_v57  ;;  %v972_v60 = vpop.f32.mrb[3].mxu0 }
 0x2ca   : > { %1058 = vtanh.f32 %v705_v59 }
 0x2cb   : > { %v709_v62 = vpop.f32.mrb[4].mxu0 }
 0x2cc   : > { %v710_v63 = vadd.f32 %v709_v62, %v621_v61  ;;  %v975_v0 = vpop.f32.mrb[5].mxu0 }
 0x2ce   : > { %1060 = vtanh.f32 %v710_v63 }
 0x2d0   : > { %v1057_v1 = vpop.eup %1056 }
 0x2d4   : > { %v1059_v2 = vpop.eup %1058 }
 0x2d5   : > { %v997_v3 = vpack.c.bf16 %v1059_v2, %v1057_v1 }
 0x2d7   : > { %998 = vmatpush3.bf16.msra.mxu1 %v997_v3 }
 0x2d8   : > { %980 = vmatprep.subr.mxu1 %v1129_v40  ;;  %v1061_v5 = vpop.eup %1060 }
 0x2db   : > { %981 = vmatpush3.msra.mxu1 %v1061_v5 }
 0x2dc   : > { %983 = vmatmul.mubr.msk.f32.vlgmr.msra.gmra.mrb[6].mxu1 %vm723_vm7, %v716_v4 }
 0x3af   : > { %v793_v13 = vpop.f32.mrb[6].mxu1 }
 0x3b0   : > { %v794_v14 = vadd.f32 %v793_v13, %v721_v12  ;;  %v984_v15 = vpop.f32.mrb[7].mxu1 }
 0x3b2   : > { %v807_v17 = vrot.slane %v794_v14, 2 }
 0x3b4   : > { %v809_v18 = vsel %vm805_vm8, %v794_v14, %v807_v17 }
 0x3b5   : > { %v817_v19 = vrot.slane %v809_v18, 2 }
 0x3b7   : > { %v819_v10 = vsel %vm815_vm9, %v794_v14, %v817_v19 }
 0x3b8   : > { %820 = vst [vmem:[%s361_s21] sm:$0x3] %v819_v10 }
 0x3b9   : > { %1075 = shalt.err (!%p1072_p3)
}
 0x3ba   : > { %s1076_s20 = scalar_lea.hbm %s1323_s28, 32  ;;  %s1080_s15 = scalar_lea.hbm %s1375_s10, 128 }
 0x3bb   : > { %p1077_p4 = scmp.ne.s32.totalorder %s1323_s28, %s1076_s20  ;;  %p1081_p9 = scmp.lt.u32.totalorder %s1323_s28, %s1375_s10 }
 0x3bc   : > { %p1082_p10 = scmp.lt.u32.totalorder %s1080_s15, %s1076_s20  ;;  %p1084_p12 = scmp.lt.u32.totalorder %s1076_s20, %s1323_s28 }
 0x3bd   : > { %p1078_p7 = pnand %p1077_p4, %p1224_p5 }
 0x3be   : > { %p1083_p11 = por %p1082_p10, %p1081_p9 }
 0x3bf   : > { %p1079_p8 = pneg %p1078_p7 }
 0x3c0   : > { %p1085_p13 = por %p1084_p12, %p1083_p11 }
 0x3c2   : > { %p1086_p0 = pnand %p1085_p13, %p1079_p8 }
 0x3c4   : > { %1089 = shalt.err (!%p1086_p0)
}
 0x3c5   : > { %999 = dma.vmem_to_hbm [thread:$0]  (%p1224_p5), %s1325_s25, 32, %s1323_s28, %s822_s29  }
 0x3c6 PF: > { %p1005_p1 = scmp.ge.s32.totalorder %s1124_s16, 2  ;;  %s847_s27 = sand.u32 1, %s1112_s13  }
 0x3c7   : > { %s848_s30 = scalar_lea.sflag [#allocation3], %s847_s27 }
 0x3c8   : > { %p1002_p2 = pnand %p1005_p1, %p1228_p6 }
 0x3ca   : > { %1107 = dma.done.wait (!%p1002_p2), %s848_s30, 32  }
 0x3cb   : > { %1109 = vsyncadd (!%p1002_p2), %s848_s30, 4294967264  ;;  %s1381_s17 = sld [smem:[#allocation5_spill]]  ;;  %s1382_s15 = sld [smem:[#allocation6_spill]] }
 0x3cc   : > { %p20_p3 = scmp.ge.s32.totalorder %s1211_s19, 6   ;;  %s1383_s13 = smov %s1116_s14 }
 0x3cd   : > { %s1385_s16 = smov %s1211_s19 }
 0x3ce   :  { %22 = sbr.rel (!%p20_p3) target bundleno = 3 (0x3), region = 98 }
 0x3d1   : > { %s1384_s14 = smov %s1381_s17 }
 0x3d5   :  { %853 = vsyncpa [#allocation3], 1 }
 0x3d6   :  { %855 = vsyncpa [#allocation3 + $0x1], 1 }

</bundles_post_ra>
